<compile_context>
chip_gen: v5e
topology: v5e:2x2
jax: 0.10.0
libtpu: 0.0.40
codegen_flags: <defaults>
</compile_context>

<pallas_src>
from functools import partial

import jax
import jax.numpy as jnp
from jax.experimental import pallas as pl
from jax.experimental.pallas import tpu as pltpu


def _round_up(n, m):
    return (n + m - 1) // m * m


# ----------------------------------------------------------------------------
# Kernel: one batch tile, 3 fused (matmul + bias + tanh) layers, weights resident
# ----------------------------------------------------------------------------
def _actor_kernel(x_ref, p_ref, o_ref, *, K, C, O, offs):
    r_w1, r_b1, r_w2, r_b2, r_wmu, r_bmu = offs

    x = x_ref[...]                                   # [TB, K]

    w1 = p_ref[r_w1:r_w1 + K, :]                     # [K, C]  (cols >= H zero)
    b1 = p_ref[r_b1:r_b1 + 1, :]                     # [1, C]
    h1 = jnp.tanh(jnp.dot(x, w1, preferred_element_type=jnp.float32) + b1)

    w2 = p_ref[r_w2:r_w2 + C, :]                     # [C, C]  (rows/cols >= H zero)
    b2 = p_ref[r_b2:r_b2 + 1, :]                     # [1, C]
    h2 = jnp.tanh(jnp.dot(h1, w2, preferred_element_type=jnp.float32) + b2)

    wmu = p_ref[r_wmu:r_wmu + C, :O]                 # [C, O]  (rows >= H, cols >= A zero)
    bmu = p_ref[r_bmu:r_bmu + 1, :O]                 # [1, O]
    mu = jnp.tanh(jnp.dot(h2, wmu, preferred_element_type=jnp.float32) + bmu)

    o_ref[...] = mu.astype(o_ref.dtype)              # [TB, O] lane-dense store


# ----------------------------------------------------------------------------
# Parameter packing: 6 tiny operands -> 1 contiguous, (8,128)-aligned f32 buffer
# ----------------------------------------------------------------------------
def pack_actor_params(params):
    w1, b1, w2, b2, wmu, bmu = params
    K, H = w1.shape
    A = wmu.shape[1]
    C = _round_up(max(H, A), 128)                    # common, lane-aligned width
    O = _round_up(A, 128)                            # output lane width (<= C)

    r_w1 = 0
    r_b1 = _round_up(K, 8)
    r_w2 = r_b1 + 8
    r_b2 = r_w2 + C                                  # w2 region padded to C rows
    r_wmu = r_b2 + 8
    r_bmu = r_wmu + C                                # wmu region padded to C rows
    R = r_bmu + 8

    buf = jnp.zeros((R, C), jnp.float32)
    buf = buf.at[r_w1:r_w1 + K, :H].set(w1)
    buf = buf.at[r_b1:r_b1 + 1, :H].set(b1.reshape(1, H))
    buf = buf.at[r_w2:r_w2 + H, :H].set(w2)
    buf = buf.at[r_b2:r_b2 + 1, :H].set(b2.reshape(1, H))
    buf = buf.at[r_wmu:r_wmu + H, :A].set(wmu)
    buf = buf.at[r_bmu:r_bmu + 1, :A].set(bmu.reshape(1, A))

    offs = (r_w1, r_b1, r_w2, r_b2, r_wmu, r_bmu)
    return buf, offs, (K, H, A, C, O)


# ----------------------------------------------------------------------------
# Wrapper
# ----------------------------------------------------------------------------
def actor_forward(x, params, *, block_b=512):
    """mu = tanh(tanh(tanh(x@W1+b1)@W2+b2)@Wmu+bmu), batch-tiled Pallas call."""
    packed, offs, (K, H, A, C, O) = pack_actor_params(params)
    R, _ = packed.shape

    B = x.shape[0]
    TB = min(block_b, _round_up(B, 8))               # batch tile (multiple of 8)
    B_pad = _round_up(B, TB)
    if B_pad != B:
        x = jnp.pad(x, ((0, B_pad - B), (0, 0)))
    grid = (B_pad // TB,)

    cost = pl.CostEstimate(
        flops=2 * B_pad * (K * C + C * C + C * O),
        transcendentals=B_pad * (2 * C + O),
        bytes_accessed=4 * (B_pad * K + R * C + B_pad * O),
    )

    out = pl.pallas_call(
        partial(_actor_kernel, K=K, C=C, O=O, offs=offs),
        out_shape=jax.ShapeDtypeStruct((B_pad, O), jnp.float32),
        grid=grid,
        in_specs=[
            pl.BlockSpec((TB, K), lambda i: (i, 0)),   # x: streamed per tile
            pl.BlockSpec((R, C), lambda i: (0, 0)),    # params: resident in VMEM
        ],
        out_specs=pl.BlockSpec((TB, O), lambda i: (i, 0)),  # lane-dense output
        compiler_params=pltpu.CompilerParams(
            dimension_semantics=("parallel",),         # megacore split on v7x
        ),
        cost_estimate=cost,
    )(x, packed)

    return out[:B, :A]


# ----------------------------------------------------------------------------
# Init (mirrors PyTorch module) + pure-JAX reference
# ----------------------------------------------------------------------------
def init_actor_params(key, num_inputs, hidden_size, action_space):
    k1, k2, k3, kb1, kb2, kb3 = jax.random.split(key, 6)
    # linear1: weight ~ N(0, 0.02), bias ~ U(-1/sqrt(fan_in), 1/sqrt(fan_in))
    w1 = 0.02 * jax.random.normal(k1, (num_inputs, hidden_size), jnp.float32)
    bound1 = 1.0 / jnp.sqrt(num_inputs)
    b1 = jax.random.uniform(kb1, (1, hidden_size), jnp.float32, -bound1, bound1)
    # linear2: weight ~ N(0, 0.02)
    w2 = 0.02 * jax.random.normal(k2, (hidden_size, hidden_size), jnp.float32)
    bound2 = 1.0 / jnp.sqrt(hidden_size)
    b2 = jax.random.uniform(kb2, (1, hidden_size), jnp.float32, -bound2, bound2)
    # mu: weight ~ U(-0.003, 0.003)
    wmu = jax.random.uniform(
        k3, (hidden_size, action_space), jnp.float32, -0.003, 0.003
    )
    bmu = jax.random.uniform(kb3, (1, action_space), jnp.float32, -bound2, bound2)
    return (w1, b1, w2, b2, wmu, bmu)


def actor_ref(x, params):
    w1, b1, w2, b2, wmu, bmu = params
    h1 = jnp.tanh(x @ w1 + b1)
    h2 = jnp.tanh(h1 @ w2 + b2)
    return jnp.tanh(h2 @ wmu + bmu)


if __name__ == "__main__":
    key = jax.random.PRNGKey(0)
    kx, kp = jax.random.split(key)

    batch = 8
    num_inputs = 16
    hidden_size = 32
    action_space = 8

    x = jax.random.normal(kx, (batch, num_inputs), jnp.float32)
    params = init_actor_params(kp, num_inputs, hidden_size, action_space)

    mu = actor_forward(x, params)
    mu = jax.block_until_ready(mu)

    mu_ref = actor_ref(x, params)
    assert mu.shape == (batch, action_space)
    assert jnp.allclose(mu, mu_ref, atol=2e-5, rtol=1e-5), "mismatch vs reference"

    print("KERNEL_OK")
</pallas_src>

<mosaic_0001>
module attributes {stable_mosaic.version = 11 : i64} {
  func.func @_actor_kernel(%arg0: i32, %arg1: memref<8x16xf32, #tpu.memory_space<vmem>>, %arg2: memref<296x128xf32, #tpu.memory_space<vmem>>, %arg3: memref<8x128xf32, #tpu.memory_space<vmem>>) attributes {dimension_semantics = [#tpu.dimension_semantics<parallel>], iteration_bounds = array<i64: 1>, scalar_prefetch = 0 : i64, scratch_operands = 0 : i64, tpu.core_type = #tpu.core_type<tc>, window_params = [{transform_indices = @transform_0, window_bounds = array<i64: 8, 16>}, {pipeline_mode = #tpu.pipeline_mode<synchronous>, transform_indices = @transform_1, window_bounds = array<i64: 296, 128>}, {transform_indices = @transform_2, window_bounds = array<i64: 8, 128>}]} {
    %c0 = arith.constant 0 : index
    %c0_0 = arith.constant 0 : index
    %0 = vector.load %arg1[%c0, %c0_0] : memref<8x16xf32, #tpu.memory_space<vmem>>, vector<8x16xf32>
    %c0_1 = arith.constant 0 : index
    %c0_2 = arith.constant 0 : index
    %1 = vector.load %arg2[%c0_1, %c0_2] : memref<296x128xf32, #tpu.memory_space<vmem>>, vector<16x128xf32>
    %c16 = arith.constant 16 : index
    %c0_3 = arith.constant 0 : index
    %2 = vector.load %arg2[%c16, %c0_3] : memref<296x128xf32, #tpu.memory_space<vmem>>, vector<1x128xf32>
    %cst = arith.constant dense<0.000000e+00> : vector<8x128xf32>
    %3 = tpu.matmul %0, %1, %cst {dimension_numbers = #tpu.dot_dimension_numbers<[1], [0], [0], [1], [0, 0, 1, 1], [], []>} : vector<8x16xf32>, vector<16x128xf32>, vector<8x128xf32> -> vector<8x128xf32>
    %4 = vector.broadcast %2 : vector<1x128xf32> to vector<8x128xf32>
    %5 = arith.addf %3, %4 : vector<8x128xf32>
    %6 = math.tanh %5 : vector<8x128xf32>
    %c24 = arith.constant 24 : index
    %c0_4 = arith.constant 0 : index
    %7 = vector.load %arg2[%c24, %c0_4] : memref<296x128xf32, #tpu.memory_space<vmem>>, vector<128x128xf32>
    %c152 = arith.constant 152 : index
    %c0_5 = arith.constant 0 : index
    %8 = vector.load %arg2[%c152, %c0_5] : memref<296x128xf32, #tpu.memory_space<vmem>>, vector<1x128xf32>
    %cst_6 = arith.constant dense<0.000000e+00> : vector<8x128xf32>
    %9 = tpu.matmul %6, %7, %cst_6 {dimension_numbers = #tpu.dot_dimension_numbers<[1], [0], [0], [1], [0, 0, 1, 1], [], []>} : vector<8x128xf32>, vector<128x128xf32>, vector<8x128xf32> -> vector<8x128xf32>
    %10 = vector.broadcast %8 : vector<1x128xf32> to vector<8x128xf32>
    %11 = arith.addf %9, %10 : vector<8x128xf32>
    %12 = math.tanh %11 : vector<8x128xf32>
    %c160 = arith.constant 160 : index
    %c0_7 = arith.constant 0 : index
    %13 = vector.load %arg2[%c160, %c0_7] : memref<296x128xf32, #tpu.memory_space<vmem>>, vector<128x128xf32>
    %c288 = arith.constant 288 : index
    %c0_8 = arith.constant 0 : index
    %14 = vector.load %arg2[%c288, %c0_8] : memref<296x128xf32, #tpu.memory_space<vmem>>, vector<1x128xf32>
    %cst_9 = arith.constant dense<0.000000e+00> : vector<8x128xf32>
    %15 = tpu.matmul %12, %13, %cst_9 {dimension_numbers = #tpu.dot_dimension_numbers<[1], [0], [0], [1], [0, 0, 1, 1], [], []>} : vector<8x128xf32>, vector<128x128xf32>, vector<8x128xf32> -> vector<8x128xf32>
    %16 = vector.broadcast %14 : vector<1x128xf32> to vector<8x128xf32>
    %17 = arith.addf %15, %16 : vector<8x128xf32>
    %18 = math.tanh %17 : vector<8x128xf32>
    %c0_10 = arith.constant 0 : index
    %c0_11 = arith.constant 0 : index
    %19 = vector.load %arg3[%c0_10, %c0_11] : memref<8x128xf32, #tpu.memory_space<vmem>>, vector<8x128xf32>
    tpu.vector_store %arg3[%c0_10, %c0_11], %18 {strides = array<i32>} : memref<8x128xf32, #tpu.memory_space<vmem>>, vector<8x128xf32>,
    return
  }
  func.func @transform_0(%arg0: i32) -> (i32, i32) {
    %c0_i32 = arith.constant 0 : i32
    %c0_i32_0 = arith.constant 0 : i32
    return %arg0, %c0_i32 : i32, i32
  }
  func.func @transform_1(%arg0: i32) -> (i32, i32) {
    %c0_i32 = arith.constant 0 : i32
    %c0_i32_0 = arith.constant 0 : i32
    %c0_i32_1 = arith.constant 0 : i32
    return %c0_i32, %c0_i32_0 : i32, i32
  }
  func.func @transform_2(%arg0: i32) -> (i32, i32) {
    %c0_i32 = arith.constant 0 : i32
    %c0_i32_0 = arith.constant 0 : i32
    return %arg0, %c0_i32 : i32, i32
  }
}

</mosaic_0001>

<bundles_post_ra>
// kernel: tpu_custom_call.1
= control target key start
LH: loop header
LB: loop body
LE: loop exit
PB: predicated region body
PF: predicated region fallthrough
CT: control target
= control target key end

     0   :  { %7 = vsyncpa [#allocation3], 0  ;;  %s291_s0 = inlined_call_operand.hbm [shape: f32[8,16], index: 0, kind: input, shape index: {}]   ;;  %s292_s1 = inlined_call_operand.hbm [shape: f32[296,128], index: 1, kind: input, shape index: {}]   ;;  %s293_s2 = inlined_call_operand.hbm [shape: f32[8,128], index: 2, kind: output, shape index: {}]  }
   0x1   :  { %8 = vsyncpa [#allocation6], 0 }
   0x2   :  { %9 = vsyncpa [#allocation4], 0  ;;  %s15_s11 = sshll.u32 %s291_s0, 4  ;;  %s262_s12 = smov [#allocation2]   ;;  %s16_s11 = int_to_ptr.hbm [resolvable:$true] %s15_s11 }
   0x3   :  { %s17_s13 = sshll.u32 %s262_s12, 4  ;;  %s25_s16 = sshll.u32 %s292_s1, 4  ;;  %s18_s13 = int_to_ptr.vmem [resolvable:$true] %s17_s13  ;;  %s26_s16 = int_to_ptr.hbm [resolvable:$true] %s25_s16 }
   0x4   :  { %20 = dma.hbm_to_vmem [thread:$0]  %s16_s11, 128, %s18_s13, [#allocation3]  }
   0x5   :  { %s263_s17 = smov [#allocation5]   ;;  %s264_s19 = smov 128  }
   0x6   :  { %s27_s18 = sshll.u32 %s263_s17, 4  ;;  %s265_s20 = smov 8   ;;  %s28_s18 = int_to_ptr.vmem [resolvable:$true] %s27_s18 }
   0x7   :  { %33 = dma.hbm_to_vmem [thread:$0]  %s26_s16, 4736, %s28_s18, [#allocation6], %s264_s19, %s264_s19, %s265_s20  }
   0x8   :  { %256 = dma.done.wait [#allocation3], 128  }
   0x9   :  { %257 = vsyncadd [#allocation3], 4294967168 }
   0xa   :  { %258 = dma.done.wait [#allocation6], 4736  }
   0xb   :  { %259 = vsyncadd [#allocation6], 4294962560  ;;  %v44_v0 = vld [vmem:[#allocation5 + $0x8] sm:$0xff]  ;;  %v43_v1 = vld [vmem:[#allocation5] sm:$0xff]  ;;  %vm47_vm0 = vcmask 130048   ;;  %s266_s0 = smov [#allocation7]  }
   0xc   :  { %65 = vmatpush.msra.mxu0 %v44_v0  ;;  %v42_v2 = vld [vmem:[#allocation2] sm:$0xff]  ;;  %v87_v3 = vld [vmem:[#allocation5 + $0x90] sm:$0xff]  ;;  %v86_v4 = vld [vmem:[#allocation5 + $0x88] sm:$0xff]  ;;  %s156_s1 = sshll.u32 %s266_s0, 4  ;;  %s158_s23 = sshll.u32 %s293_s2, 4  ;;  %s157_s1 = int_to_ptr.vmem [resolvable:$true] %s156_s1  ;;  %s159_s23 = int_to_ptr.hbm [resolvable:$true] %s158_s23 }
   0xd   :  { %90 = vmatpush.msra.mxu1 %v87_v3  ;;  %v85_v5 = vld [vmem:[#allocation5 + $0x80] sm:$0xff]  ;;  %v84_v6 = vld [vmem:[#allocation5 + $0x78] sm:$0xff]  ;;  %v83_v7 = vld [vmem:[#allocation5 + $0x70] sm:$0xff] }
   0xe   :  { %66 = vmatpush.msra.mxu0 %v43_v1  ;;  %v82_v8 = vld [vmem:[#allocation5 + $0x68] sm:$0xff]  ;;  %v81_v9 = vld [vmem:[#allocation5 + $0x60] sm:$0xff]  ;;  %v80_v10 = vld [vmem:[#allocation5 + $0x58] sm:$0xff] }
   0xf   :  { %169 = vmatmul.msk.f32.vlgmr.msra.gmra.mxu0 %vm47_vm0, %v42_v2  ;;  %91 = vmatpush.msra.mxu1 %v86_v4  ;;  %v79_v11 = vld [vmem:[#allocation5 + $0x50] sm:$0xff]  ;;  %v78_v12 = vld [vmem:[#allocation5 + $0x48] sm:$0xff]  ;;  %v77_v13 = vld [vmem:[#allocation5 + $0x40] sm:$0xff] }
  0x10   :  { %v76_v14 = vld [vmem:[#allocation5 + $0x38] sm:$0xff]  ;;  %v75_v15 = vld [vmem:[#allocation5 + $0x30] sm:$0xff]  ;;  %v74_v16 = vld [vmem:[#allocation5 + $0x28] sm:$0xff] }
  0x11   :  { %92 = vmatpush.msra.mxu1 %v85_v5  ;;  %v73_v17 = vld [vmem:[#allocation5 + $0x20] sm:$0xff]  ;;  %v72_v18 = vld [vmem:[#allocation5 + $0x18] sm:$0xff]  ;;  %v125_v20 = vld [vmem:[#allocation5 + $0x110] sm:$0xff] }
  0x12   :  { %v126_v19 = vld [vmem:[#allocation5 + $0x118] sm:$0xff]  ;;  %v124_v21 = vld [vmem:[#allocation5 + $0x108] sm:$0xff]  ;;  %v123_v22 = vld [vmem:[#allocation5 + $0x100] sm:$0xff] }
  0x13   :  { %93 = vmatpush.msra.mxu1 %v84_v6  ;;  %129 = vmatpush.msra.mxu2 %v126_v19  ;;  %v122_v23 = vld [vmem:[#allocation5 + $0xf8] sm:$0xff]  ;;  %v121_v24 = vld [vmem:[#allocation5 + $0xf0] sm:$0xff]  ;;  %v120_v25 = vld [vmem:[#allocation5 + $0xe8] sm:$0xff] }
  0x14   :  { %v119_v26 = vld [vmem:[#allocation5 + $0xe0] sm:$0xff]  ;;  %v118_v27 = vld [vmem:[#allocation5 + $0xd8] sm:$0xff]  ;;  %v117_v28 = vld [vmem:[#allocation5 + $0xd0] sm:$0xff] }
  0x15   :  { %94 = vmatpush.msra.mxu1 %v83_v7  ;;  %130 = vmatpush.msra.mxu2 %v125_v20  ;;  %v116_v29 = vld [vmem:[#allocation5 + $0xc8] sm:$0xff]  ;;  %v175_v30 = vld [vmem:[#allocation5 + $0x10] ss:$0 sm:$0xff]  ;;  %v115_v34 = vld [vmem:[#allocation5 + $0xc0] sm:$0xff] }
  0x16   :  { %v114_v35 = vld [vmem:[#allocation5 + $0xb8] sm:$0xff]  ;;  %v113_v36 = vld [vmem:[#allocation5 + $0xb0] sm:$0xff]  ;;  %v112_v37 = vld [vmem:[#allocation5 + $0xa8] sm:$0xff] }
  0x17   :  { %95 = vmatpush.msra.mxu1 %v82_v8  ;;  %131 = vmatpush.msra.mxu2 %v124_v21  ;;  %v111_v38 = vld [vmem:[#allocation5 + $0xa0] sm:$0xff]  ;;  %v176_v39 = vld [vmem:[#allocation5 + $0x98] ss:$0 sm:$0xff] }
  0x18   :  { %v177_v43 = vld [vmem:[#allocation5 + $0x120] ss:$0 sm:$0xff] }
  0x19   :  { %96 = vmatpush.msra.mxu1 %v81_v9  ;;  %132 = vmatpush.msra.mxu2 %v123_v22 }
  0x1b   :  { %97 = vmatpush.msra.mxu1 %v80_v10  ;;  %133 = vmatpush.msra.mxu2 %v122_v23 }
  0x1d   :  { %98 = vmatpush.msra.mxu1 %v79_v11  ;;  %134 = vmatpush.msra.mxu2 %v121_v24 }
  0x1f   :  { %99 = vmatpush.msra.mxu1 %v78_v12  ;;  %135 = vmatpush.msra.mxu2 %v120_v25 }
  0x21   :  { %100 = vmatpush.msra.mxu1 %v77_v13  ;;  %136 = vmatpush.msra.mxu2 %v119_v26 }
  0x23   :  { %101 = vmatpush.msra.mxu1 %v76_v14  ;;  %137 = vmatpush.msra.mxu2 %v118_v27 }
  0x25   :  { %102 = vmatpush.msra.mxu1 %v75_v15  ;;  %138 = vmatpush.msra.mxu2 %v117_v28 }
  0x27   :  { %103 = vmatpush.msra.mxu1 %v74_v16  ;;  %139 = vmatpush.msra.mxu2 %v116_v29 }
  0x29   :  { %104 = vmatpush.msra.mxu1 %v73_v17  ;;  %140 = vmatpush.msra.mxu2 %v115_v34 }
  0x2b   :  { %105 = vmatpush.msra.mxu1 %v72_v18  ;;  %141 = vmatpush.msra.mxu2 %v114_v35 }
  0x2d   :  { %142 = vmatpush.msra.mxu2 %v113_v36 }
  0x2f   :  { %143 = vmatpush.msra.mxu2 %v112_v37 }
  0x31   :  { %144 = vmatpush.msra.mxu2 %v111_v38 }
  0x8c   :  { %v68_v31 = vpop.f32.mrf.mxu0 }
  0x8d   :  { %v69_v32 = vadd.f32 %v175_v30, %v68_v31 }
  0x8f   :  { %178 = vtanh.f32 %v69_v32 }
  0x95   :  { %v179_v33 = vpop.eup %178 }
  0x96   :  { %106 = vmatmul.f32.vlgmr.msra.gmra.mxu1 %v179_v33 }
 0x113   :  { %v107_v40 = vpop.f32.mrf.mxu1 }
 0x114   :  { %v108_v41 = vadd.f32 %v176_v39, %v107_v40 }
 0x116   :  { %180 = vtanh.f32 %v108_v41 }
 0x11c   :  { %v181_v42 = vpop.eup %180 }
 0x11d   :  { %145 = vmatmul.f32.vlgmr.msra.gmra.mxu2 %v181_v42 }
 0x1a0   :  { %v146_v44 = vpop.f32.mrf.mxu2 }
 0x1a1   :  { %v147_v45 = vadd.f32 %v177_v43, %v146_v44 }
 0x1a3   :  { %182 = vtanh.f32 %v147_v45 }
 0x1a9   :  { %v183_v46 = vpop.eup %182 }
 0x1aa   :  { %150 = vst [vmem:[#allocation7] sm:$0xff] %v183_v46 }
 0x1ab   :  { %161 = dma.vmem_to_hbm [thread:$0]  %s157_s1, 128, %s159_s23, [#allocation4]  }
 0x1ac   :  { %260 = dma.done.wait [#allocation4], 128  }
 0x1ad   :  { %261 = vsyncadd [#allocation4], 4294967168 }
 0x1ae   :  { %166 = vsyncpa [#allocation3], 1 }
 0x1af   :  { %167 = vsyncpa [#allocation6], 1 }
 0x1b0   :  { %168 = vsyncpa [#allocation4], 1 }

</bundles_post_ra>
